<compile_context>
chip_gen: v5e
topology: v5e:2x2
jax: 0.10.0
libtpu: 0.0.40
codegen_flags: <defaults>
</compile_context>

<pallas_src>
import jax
import jax.numpy as jnp
from jax.experimental import pallas as pl
from jax.experimental.pallas import tpu as pltpu


def cond_norm3_kernel(seq_ref, c_ref, w_cat_ref, b_cat_ref, out_ref):
    h = out_ref.shape[-1]

    # Fused conditioning projection for this batch row: (1, C) @ (C, 3H).
    proj = jnp.dot(c_ref[...], w_cat_ref[...],
                   preferred_element_type=jnp.float32)             # (1, 3H)
    proj = proj + b_cat_ref[...].astype(jnp.float32)

    scale_e = jnp.exp(proj[:, 0:h])          # EUP exp on the tiny (1, H) slice
    bias    = proj[:, h:2 * h]
    ssign   = proj[:, 2 * h:3 * h]

    x = seq_ref[...].astype(jnp.float32)                           # (TL, H)
    # softsign(x) = x / (1 + |x|); reciprocal goes to the EUP slot (exact).
    # out = x*exp(scale) + bias + softsign(x)*ssign
    #     = x*(exp(scale) + ssign/(1+|x|)) + bias   (one fewer full-tile mul)
    r = pl.reciprocal(1.0 + jnp.abs(x), approx=False)
    out = x * (scale_e + r * ssign) + bias                         # (1,H) bcast
    out_ref[...] = out.astype(out_ref.dtype)


def cond_norm3(seq, c, w_scale, b_scale, w_bias, b_bias, w_ss, b_ss,
               *, block_l=None, vmem_limit_bytes=32 * 1024 * 1024):
    B, L, H = seq.shape
    C = c.shape[-1]

    # Fuse the three projections into a single matmul (one MXU push, one bias
    # add, 2 constant refs instead of 6).
    w_cat = jnp.concatenate([w_scale, w_bias, w_ss], axis=-1)            # (C, 3H)
    b_cat = jnp.concatenate([b_scale.reshape(1, H),
                             b_bias.reshape(1, H),
                             b_ss.reshape(1, H)], axis=-1)               # (1, 3H)
    c3 = c.reshape(B, 1, C)   # per-batch row selected purely via BlockSpec

    # Tile the sequence axis. ~2 MiB per seq block => 2 input + 2 output
    # pipeline buffers (~8 MiB) stay well under every chip's VMEM; large
    # enough to sit at the HBM roofline and amortize per-grid-step overhead.
    if block_l is None:
        itemsize = jnp.dtype(seq.dtype).itemsize
        target_block_bytes = 2 * 1024 * 1024
        tl = max(8, (target_block_bytes // max(1, H * itemsize)) // 8 * 8)
        block_l = L if L <= tl else tl
    grid = (B, pl.cdiv(L, block_l))

    seq_spec = pl.BlockSpec((pl.Squeezed(), block_l, H),
                            lambda b, l: (b, l, 0))
    c_spec = pl.BlockSpec((pl.Squeezed(), 1, C), lambda b, l: (b, 0, 0))
    const2d = lambda shape: pl.BlockSpec(shape, lambda b, l: (0, 0))

    return pl.pallas_call(
        cond_norm3_kernel,
        out_shape=jax.ShapeDtypeStruct(seq.shape, seq.dtype),
        grid=grid,
        in_specs=[seq_spec,
                  c_spec,
                  const2d(w_cat.shape),
                  const2d(b_cat.shape)],
        out_specs=seq_spec,
        compiler_params=pltpu.CompilerParams(
            dimension_semantics=("parallel", "parallel"),
            vmem_limit_bytes=vmem_limit_bytes),
    )(seq, c3, w_cat, b_cat)


def cond_norm3_ref(seq, c, w_scale, b_scale, w_bias, b_bias, w_ss, b_ss):
    scale = (c @ w_scale + b_scale)[:, None, :]
    bias  = (c @ w_bias  + b_bias)[:, None, :]
    ssign = (c @ w_ss    + b_ss)[:, None, :]
    soft = seq / (1.0 + jnp.abs(seq))
    return seq * jnp.exp(scale) + bias + soft * ssign


if __name__ == "__main__":
    # batch, seq-len, hdim (lane-dense: multiple of 128), cdim
    B, L, H, C = 2, 128, 128, 16

    key = jax.random.PRNGKey(0)
    ks = jax.random.split(key, 8)

    seq = jax.random.normal(ks[0], (B, L, H), dtype=jnp.float32)
    c   = jax.random.normal(ks[1], (B, C),    dtype=jnp.float32)

    # Synthetic nn.Linear(cdim, hdim) x3 params, stored pre-transposed as
    # (C, H) weight + (H,) bias so y = c @ W + b matches torch's c @ W.T + b.
    # Small scale so exp() stays tame.
    w_scale = 0.1 * jax.random.normal(ks[2], (C, H), dtype=jnp.float32)
    b_scale = 0.1 * jax.random.normal(ks[3], (H,),   dtype=jnp.float32)
    w_bias  = 0.1 * jax.random.normal(ks[4], (C, H), dtype=jnp.float32)
    b_bias  = 0.1 * jax.random.normal(ks[5], (H,),   dtype=jnp.float32)
    w_ss    = 0.1 * jax.random.normal(ks[6], (C, H), dtype=jnp.float32)
    b_ss    = 0.1 * jax.random.normal(ks[7], (H,),   dtype=jnp.float32)

    out = cond_norm3(seq, c, w_scale, b_scale, w_bias, b_bias, w_ss, b_ss)
    out = jax.block_until_ready(out)

    ref = cond_norm3_ref(seq, c, w_scale, b_scale, w_bias, b_bias, w_ss, b_ss)
    assert out.shape == (B, L, H)
    assert jnp.allclose(out, ref, atol=1e-5, rtol=1e-5), \
        float(jnp.max(jnp.abs(out - ref)))

    print("KERNEL_OK")
</pallas_src>

<mosaic_0001>
module attributes {stable_mosaic.version = 11 : i64} {
  func.func @cond_norm3_kernel(%arg0: i32, %arg1: i32, %arg2: memref<1x128x128xf32, #tpu.memory_space<vmem>>, %arg3: memref<1x1x16xf32, #tpu.memory_space<vmem>>, %arg4: memref<16x384xf32, #tpu.memory_space<vmem>>, %arg5: memref<1x384xf32, #tpu.memory_space<vmem>>, %arg6: memref<1x128x128xf32, #tpu.memory_space<vmem>>) attributes {dimension_semantics = [#tpu.dimension_semantics<parallel>, #tpu.dimension_semantics<parallel>], iteration_bounds = array<i64: 2, 1>, scalar_prefetch = 0 : i64, scratch_operands = 0 : i64, tpu.core_type = #tpu.core_type<tc>, window_params = [{transform_indices = @transform_0, window_bounds = array<i64: 1, 128, 128>}, {transform_indices = @transform_1, window_bounds = array<i64: 1, 1, 16>}, {pipeline_mode = #tpu.pipeline_mode<synchronous>, transform_indices = @transform_2, window_bounds = array<i64: 16, 384>}, {pipeline_mode = #tpu.pipeline_mode<synchronous>, transform_indices = @transform_3, window_bounds = array<i64: 1, 384>}, {transform_indices = @transform_4, window_bounds = array<i64: 1, 128, 128>}]} {
    %c0 = arith.constant 0 : index
    %c0_0 = arith.constant 0 : index
    %c0_1 = arith.constant 0 : index
    %0 = vector.load %arg3[%c0, %c0_0, %c0_1] : memref<1x1x16xf32, #tpu.memory_space<vmem>>, vector<1x1x16xf32>
    %1 = vector.shape_cast %0 : vector<1x1x16xf32> to vector<1x16xf32>
    %c0_2 = arith.constant 0 : index
    %c0_3 = arith.constant 0 : index
    %2 = vector.load %arg4[%c0_2, %c0_3] : memref<16x384xf32, #tpu.memory_space<vmem>>, vector<16x384xf32>
    %cst = arith.constant dense<0.000000e+00> : vector<1x384xf32>
    %3 = tpu.matmul %1, %2, %cst {dimension_numbers = #tpu.dot_dimension_numbers<[1], [0], [0], [1], [0, 0, 1, 1], [], []>} : vector<1x16xf32>, vector<16x384xf32>, vector<1x384xf32> -> vector<1x384xf32>
    %c0_4 = arith.constant 0 : index
    %c0_5 = arith.constant 0 : index
    %4 = vector.load %arg5[%c0_4, %c0_5] : memref<1x384xf32, #tpu.memory_space<vmem>>, vector<1x384xf32>
    %5 = arith.addf %3, %4 : vector<1x384xf32>
    %6 = vector.extract_strided_slice %5 {offsets = [0, 0], sizes = [1, 128], strides = [1, 1]} : vector<1x384xf32> to vector<1x128xf32>
    %7 = math.exp %6 : vector<1x128xf32>
    %8 = vector.extract_strided_slice %5 {offsets = [0, 128], sizes = [1, 128], strides = [1, 1]} : vector<1x384xf32> to vector<1x128xf32>
    %9 = vector.extract_strided_slice %5 {offsets = [0, 256], sizes = [1, 128], strides = [1, 1]} : vector<1x384xf32> to vector<1x128xf32>
    %c0_6 = arith.constant 0 : index
    %c0_7 = arith.constant 0 : index
    %c0_8 = arith.constant 0 : index
    %10 = vector.load %arg2[%c0_6, %c0_7, %c0_8] : memref<1x128x128xf32, #tpu.memory_space<vmem>>, vector<1x128x128xf32>
    %11 = vector.shape_cast %10 : vector<1x128x128xf32> to vector<128x128xf32>
    %12 = math.absf %11 : vector<128x128xf32>
    %cst_9 = arith.constant 1.000000e+00 : f32
    %13 = vector.broadcast %cst_9 : f32 to vector<128x128xf32>
    %14 = arith.addf %13, %12 : vector<128x128xf32>
    %15 = tpu.reciprocal %14 : vector<128x128xf32> -> vector<128x128xf32>
    %16 = vector.broadcast %9 : vector<1x128xf32> to vector<128x128xf32>
    %17 = arith.mulf %15, %16 : vector<128x128xf32>
    %18 = vector.broadcast %7 : vector<1x128xf32> to vector<128x128xf32>
    %19 = arith.addf %18, %17 : vector<128x128xf32>
    %20 = arith.mulf %11, %19 : vector<128x128xf32>
    %21 = vector.broadcast %8 : vector<1x128xf32> to vector<128x128xf32>
    %22 = arith.addf %20, %21 : vector<128x128xf32>
    %c0_10 = arith.constant 0 : index
    %c0_11 = arith.constant 0 : index
    %c0_12 = arith.constant 0 : index
    %23 = vector.load %arg6[%c0_10, %c0_11, %c0_12] : memref<1x128x128xf32, #tpu.memory_space<vmem>>, vector<1x128x128xf32>
    %24 = vector.shape_cast %23 : vector<1x128x128xf32> to vector<128x128xf32>
    %25 = vector.shape_cast %22 : vector<128x128xf32> to vector<1x128x128xf32>
    tpu.vector_store %arg6[%c0_10, %c0_11, %c0_12], %25 {strides = array<i32>} : memref<1x128x128xf32, #tpu.memory_space<vmem>>, vector<1x128x128xf32>,
    return
  }
  func.func @transform_0(%arg0: i32, %arg1: i32) -> (i32, i32, i32) {
    %c0_i32 = arith.constant 0 : i32
    %c0_i32_0 = arith.constant 0 : i32
    return %arg0, %arg1, %c0_i32 : i32, i32, i32
  }
  func.func @transform_1(%arg0: i32, %arg1: i32) -> (i32, i32, i32) {
    %c0_i32 = arith.constant 0 : i32
    %c0_i32_0 = arith.constant 0 : i32
    %c0_i32_1 = arith.constant 0 : i32
    return %arg0, %c0_i32, %c0_i32_0 : i32, i32, i32
  }
  func.func @transform_2(%arg0: i32, %arg1: i32) -> (i32, i32) {
    %c0_i32 = arith.constant 0 : i32
    %c0_i32_0 = arith.constant 0 : i32
    %c0_i32_1 = arith.constant 0 : i32
    return %c0_i32, %c0_i32_0 : i32, i32
  }
  func.func @transform_3(%arg0: i32, %arg1: i32) -> (i32, i32) {
    %c0_i32 = arith.constant 0 : i32
    %c0_i32_0 = arith.constant 0 : i32
    %c0_i32_1 = arith.constant 0 : i32
    return %c0_i32, %c0_i32_0 : i32, i32
  }
  func.func @transform_4(%arg0: i32, %arg1: i32) -> (i32, i32, i32) {
    %c0_i32 = arith.constant 0 : i32
    %c0_i32_0 = arith.constant 0 : i32
    return %arg0, %arg1, %c0_i32 : i32, i32, i32
  }
}

</mosaic_0001>

<bundles_post_ra>
// kernel: tpu_custom_call.1
= control target key start
LH: loop header
LB: loop body
LE: loop exit
PB: predicated region body
PF: predicated region fallthrough
CT: control target
= control target key end

     0   :  { %s2073_s0 = inlined_call_operand.hbm [shape: f32[2,128,128], index: 0, kind: input, shape index: {}]   ;;  %s2074_s1 = inlined_call_operand.hbm [shape: f32[2,1,16], index: 1, kind: input, shape index: {}]   ;;  %s2075_s2 = inlined_call_operand.hbm [shape: f32[16,384], index: 2, kind: input, shape index: {}]   ;;  %s2076_s3 = inlined_call_operand.hbm [shape: f32[1,384], index: 3, kind: input, shape index: {}]   ;;  %s2077_s4 = inlined_call_operand.hbm [shape: f32[2,128,128], index: 4, kind: output, shape index: {}]  }
   0x1   :  { %2080 = sst [smem:[#allocation19_spill]] %s2075_s2 }
   0x2   :  { %2081 = sst [smem:[#allocation20_spill]] %s2076_s3 }
   0x3   :  { %9 = vsyncpa [#allocation3], 0 }
   0x4   :  { %11 = vsyncpa [#allocation3 + $0x1], 0 }
   0x5   :  { %12 = vsyncpa [#allocation6], 0 }
   0x6   :  { %14 = vsyncpa [#allocation6 + $0x1], 0 }
   0x7   :  { %15 = vsyncpa [#allocation9], 0 }
   0x8   :  { %16 = vsyncpa [#allocation4], 0 }
   0x9   :  { %18 = vsyncpa [#allocation4 + $0x1], 0  ;;  %s1284_s15 = smov 0   ;;  %s1286_s16 = smov 0  }
   0xa   :  { %s1288_s17 = smov 0   ;;  %s1290_s18 = smov 0  }
   0xb   :  { %s1292_s19 = smov 0   ;;  %s1294_s20 = smov 0  }
   0xc LB: > { %2082 = sst [smem:[#allocation16_spill]] %s1237_s17  ;;  %s1315_s21 = sadd.s32 4294967295, %s1249_s20   ;;  %s1249_s20 = sphi %s1294_s20, %s24_s20   ;;  %s1245_s19 = sphi %s1292_s19, %s2155_s19   ;;  %s1241_s18 = sphi %s1290_s18, %s2154_s18   ;;  %s1237_s17 = sphi %s1288_s17, %s2153_s17   ;;  %s1233_s16 = sphi %s1286_s16, %s2152_s16   ;;  %s1229_s15 = sphi %s1284_s15, %s2151_s15  }
   0xd   : > { %s884_s22 = sadd.s32 4294967294, %s1249_s20   ;;  %p58_p0 = scmp.ne.s32.totalorder %s1233_s16, %s1229_s15 }
   0xe   : > { %p59_p1 = scmp.eq.s32.totalorder %s1315_s21, 0  ;;  %p152_p2 = scmp.eq.s32.totalorder %s1315_s21, 1 }
   0xf   : > { %p158_p3 = scmp.eq.s32.totalorder %s884_s22, 1  ;;  %p885_p5 = scmp.ge.s32.totalorder %s1249_s20, 1 }
  0x10   : > { %p1324_p4 = por %p59_p1, %p58_p0  ;;  %p165_p7 = scmp.lt.s32.totalorder %s1249_s20, 3 }
  0x11   : > { %p1329_p6 = por %p158_p3, %p58_p0  ;;  %s2085_s2 = sld [smem:[#allocation19_spill]] }
  0x12   : > { %p1337_p8 = pnand %p885_p5, %p165_p7  ;;  %s1251_s29 = smov [#allocation7]  }
  0x13   : > { %s178_s30 = sshll.u32 %s1251_s29, 4  ;;  %p888_p11 = scmp.ge.s32.totalorder %s1249_s20, 2  ;;  %s179_s30 = int_to_ptr.vmem [resolvable:$true] %s178_s30 }
  0x14   : > { %p921_p9 = pneg %p1337_p8  ;;  %s2087_s3 = sld [smem:[#allocation20_spill]] }
  0x15   : > { %s1252_s8 = smov 384   ;;  %s1253_s9 = smov 24  }
  0x16   : > { %p922_p10 = pnand %p921_p9, %p59_p1  ;;  %s1254_s10 = smov [#allocation8]  }
  0x17   : > { %s176_s27 = sshll.u32 %s2085_s2, 4  ;;  %s193_s11 = sshll.u32 %s1254_s10, 4  ;;  %s177_s27 = int_to_ptr.hbm [resolvable:$true] %s176_s27  ;;  %s194_s11 = int_to_ptr.vmem [resolvable:$true] %s193_s11 }
  0x18   : > { %924 = dma.hbm_to_vmem [thread:$0]  (!%p922_p10), %s177_s27, 768, %s179_s30, [#allocation6], %s1252_s8, %s1252_s8, %s1253_s9  }
  0x19   : > { %s36_s12 = sadd.s32 1, %s1245_s19  ;;  %s45_s13 = sadd.s32 1, %s1237_s17 }
  0x1a   : > { %s191_s7 = sshll.u32 %s2087_s3, 4  ;;  %p38_p12 = scmp.ge.s32.totalorder %s36_s12, 2  ;;  %s192_s7 = int_to_ptr.hbm [resolvable:$true] %s191_s7 }
  0x1b   : > { %927 = dma.hbm_to_vmem [thread:$0]  (!%p922_p10), %s192_s7, 48, %s194_s11, [#allocation9]  }
  0x1c   : > { %p52_p13 = scmp.ne.s32.totalorder %s1237_s17, %s1233_s16  ;;  %p53_p0 = scmp.eq.s32.totalorder %s1249_s20, 0 }
  0x1d   : > { %p941_p3 = scmp.lt.s32.totalorder %s1249_s20, 2  ;;  %s2157_s12 = smov (%p38_p12, %s36_s12), 0 }
  0x1e   : > { %2088 = sst [smem:[#allocation17_spill]] %s2157_s12  ;;  %p1357_p5 = por %p53_p0, %p52_p13 }
  0x1f   : > { %p1363_p7 = por %p152_p2, %p52_p13  ;;  %s40_s25 = ssub.s32 %s1245_s19, %s2157_s12 }
  0x20   : > { %s204_s26 = sand.u32 1, %s1237_s17   ;;  %p43_p9 = scmp.eq.s32.totalorder %s40_s25, 0 }
  0x21   : > { %s889_s27 = sshll.u32 %s204_s26, 7  ;;  %s905_s29 = sshll.u32 %s1245_s19, 7 }
  0x22   : > { %s1372_s30 = scalar_select %p43_p9, %s1237_s17, %s45_s13  }
  0x23   : > { %s215_s7 = scalar_lea.hbm %s2073_s0, %s905_s29  ;;  %s208_s9 = scalar_lea.vmem [#allocation2], %s889_s27 }
  0x24   : > { %2091 = sst [smem:[#allocation18_spill]] %s1372_s30  ;;  %s216_s8 = sshll.u32 %s215_s7, 4  ;;  %s217_s8 = int_to_ptr.hbm [resolvable:$true] %s216_s8 }
  0x25   : > { %s218_s10 = sshll.u32 %s208_s9, 4  ;;  %p929_p2 = pnand %p941_p3, %p1357_p5  ;;  %s219_s10 = int_to_ptr.vmem [resolvable:$true] %s218_s10 }
  0x26   : > { %s228_s11 = sand.u32 1, %s1249_s20   ;;  %s205_s2 = scalar_lea.sflag [#allocation3], %s204_s26 }
  0x27   : > { %s1255_s25 = smov 128   ;;  %s1256_s3 = smov 8  }
  0x28   : > { %931 = dma.hbm_to_vmem [thread:$0]  (!%p929_p2), %s217_s8, 2048, %s219_s10, %s205_s2, %s1255_s25, %s1255_s25, %s1256_s3  }
  0x29   : > { %s234_s30 = scalar_lea.hbm %s2074_s1, %s1245_s19  ;;  %s231_s5 = scalar_lea.vmem [#allocation5], %s204_s26 }
  0x2a   : > { %s236_s17 = sshll.u32 %s234_s30, 4  ;;  %s238_s29 = sshll.u32 %s231_s5, 4  ;;  %s237_s17 = int_to_ptr.hbm [resolvable:$true] %s236_s17  ;;  %s239_s29 = int_to_ptr.vmem [resolvable:$true] %s238_s29 }
  0x2b   : > { %s229_s27 = scalar_lea.sflag [#allocation6], %s228_s11  ;;  %247 = sbr.rel (%p1337_p8) target bundleno = 233 (0xe9), region = 36 }
  0x2c   : > { %934 = dma.hbm_to_vmem [thread:$0]  (!%p929_p2), %s237_s17, 16, %s239_s29, %s229_s27  }
  0x2d   : > { %s1389_s14 = sand.u32 (!%p1337_p8), 1, %s1233_s16  }
  0x2e   : > { %s893_s2 = sshll.u32 (!%p1337_p8), %s1389_s14, 7  ;;  %s250_s3 = scalar_lea.sflag (!%p1337_p8), [#allocation3], %s1389_s14 }
  0x2f   : > { %s1395_s12 = scalar_lea.vmem (!%p1337_p8), [#allocation2], %s893_s2 }
  0x30   : > { %1208 = dma.done.wait (%p1324_p4), %s250_s3, 2048  }
  0x31   : > { %1210 = vsyncadd (%p1324_p4), %s250_s3, 4294965248  ;;  %s259_s17 = sand.u32 1, %s1315_s21   ;;  %s262_s26 = scalar_lea.vmem [#allocation5], %s1389_s14 }
  0x32   : > { %s260_s28 = scalar_lea.sflag [#allocation6], %s259_s17 }
  0x33   : > { %1212 = dma.done.wait (%p1324_p4), %s260_s28, 16  }
  0x34   : > { %1214 = vsyncadd (%p1324_p4), %s260_s28, 4294967280 }
  0x35   : > { %1216 = dma.done.wait (%p59_p1), [#allocation6], 768  }
  0x36   : > { %1218 = vsyncadd (%p59_p1), [#allocation6], 4294966528 }
  0x37   : > { %1220 = dma.done.wait (%p59_p1), [#allocation9], 48  }
  0x38   : > { %1222 = vsyncadd (%p59_p1), [#allocation9], 4294967248  ;;  %v308_v0 = vld [vmem:[#allocation7 + $0x18] sm:$0xff]  ;;  %v310_v1 = vld [vmem:[#allocation7 + $0x28] sm:$0xff]  ;;  %vm319_vm0 = vcmask 130048   ;;  %s1995_s21 = scalar_lea.vmem [#allocation10], %s893_s2 }
  0x39   : > { %v305_v2 = vld [vmem:[#allocation7] sm:$0xff]  ;;  %337 = vmatpush.msra.mxu0 %v308_v0  ;;  %377 = vmatpush.msra.mxu2 %v310_v1  ;;  %v304_v3 = vld [vmem:[%s262_s26] sm:$0x1]  ;;  %v307_v4 = vld [vmem:[#allocation7 + $0x10] sm:$0xff]  ;;  %s906_s23 = sshll.u32 %s1241_s18, 7  ;;  %s755_s7 = sshll.u32 %s1995_s21, 4  ;;  %s756_s7 = int_to_ptr.vmem [resolvable:$true] %s755_s7 }
  0x3a   : > { %v309_v5 = vld [vmem:[#allocation7 + $0x20] sm:$0xff]  ;;  %v306_v6 = vld [vmem:[#allocation7 + $0x8] sm:$0xff]  ;;  %v1427_v12 = vld [vmem:[%s1395_s12 + $0x18] sm:$0xff]  ;;  %s754_s6 = scalar_lea.hbm %s2077_s4, %s906_s23  ;;  %s741_s9 = scalar_lea.sflag [#allocation4], %s1389_s14 }
  0x3b   : > { %357 = vmatpush.msra.mxu1 %v309_v5  ;;  %338 = vmatpush.msra.mxu0 %v305_v2  ;;  %v1416_v7 = vld [vmem:[%s1395_s12] sm:$0xff]  ;;  %v1419_v8 = vld [vmem:[%s1395_s12 + $0x8] sm:$0xff]  ;;  %v1422_v9 = vld [vmem:[%s1395_s12 + $0x10] sm:$0xff]  ;;  %v404_v18 = vand.u32 2147483647, %v1427_v12  ;;  %s757_s8 = sshll.u32 %s754_s6, 4  ;;  %s758_s8 = int_to_ptr.hbm [resolvable:$true] %s757_s8 }
  0x3c   : > { %378 = vmatpush.msra.mxu2 %v307_v4  ;;  %897 = vmatmul.msk.f32.vlgmr.msra.gmra.mxu0 %vm319_vm0, %v304_v3  ;;  %v401_v10 = vand.u32 2147483647, %v1416_v7  ;;  %v402_v11 = vand.u32 2147483647, %v1419_v8  ;;  %v403_v13 = vand.u32 2147483647, %v1422_v9 }
  0x3d   : > { %899 = vmatmul.msk.f32.vlgmr.msra.gmra.mxu2 %vm319_vm0, %v304_v3  ;;  %358 = vmatpush.msra.mxu1 %v306_v6  ;;  %v1435_v16 = vld [vmem:[%s1395_s12 + $0x20] sm:$0xff]  ;;  %v1444_v19 = vld [vmem:[%s1395_s12 + $0x28] sm:$0xff]  ;;  %v1448_v21 = vld [vmem:[%s1395_s12 + $0x30] sm:$0xff]  ;;  %v1456_v24 = vadd.f32 1.0, %v404_v18  ;;  %s1169_s10 = sshra.s32 %s758_s8, 4  ;;  %s1175_s5 = scalar_lea.hbm %s2077_s4, 256  ;;  %s1170_s10 = int_to_ptr.hbm [resolvable:$true] %s1169_s10 }
  0x3e   : > { %898 = vmatmul.msk.f32.vlgmr.msra.gmra.mxu1 %vm319_vm0, %v304_v3  ;;  %v1430_v14 = vadd.f32 1.0, %v401_v10  ;;  %v1432_v15 = vadd.f32 1.0, %v402_v11  ;;  %v1437_v17 = vadd.f32 1.0, %v403_v13  ;;  %v405_v20 = vand.u32 2147483647, %v1435_v16  ;;  %v1451_v22 = vld [vmem:[%s1395_s12 + $0x38] sm:$0xff]  ;;  %p1176_p10 = scmp.lt.s32.totalorder %s1170_s10, %s2077_s4 }
  0x3f   : > { %v1454_v23 = vld [vmem:[%s1395_s12 + $0x40] sm:$0xff]  ;;  %v1461_v26 = vld [vmem:[%s1395_s12 + $0x48] sm:$0xff]  ;;  %v406_v27 = vand.u32 2147483647, %v1444_v19  ;;  %v1466_v29 = vld [vmem:[#allocation8] sm:$0x7]  ;;  %vm480_vm13 = vweird.f32 %v1456_v24 }
  0x40   : > { %1001 = vrcp.f32 %v1430_v14  ;;  %v1469_v30 = vld [vmem:[%s1395_s12 + $0x50] sm:$0xff]  ;;  %v1472_v31 = vld [vmem:[%s1395_s12 + $0x58] sm:$0xff]  ;;  %v407_v32 = vand.u32 2147483647, %v1448_v21  ;;  %v1475_v33 = vadd.f32 1.0, %v405_v20  ;;  %v1482_v36 = vld [vmem:[%s1395_s12 + $0x60] sm:$0xff]  ;;  %vm438_vm1 = vweird.f32 %v1430_v14 }
  0x41   : > { %1003 = vrcp.f32 %v1432_v15  ;;  %v1485_v37 = vld [vmem:[%s1395_s12 + $0x68] sm:$0xff]  ;;  %v408_v38 = vand.u32 2147483647, %v1451_v22  ;;  %v409_v39 = vand.u32 2147483647, %v1454_v23  ;;  %v1492_v41 = vld [vmem:[%s1395_s12 + $0x70] sm:$0xff]  ;;  %vm452_vm3 = vweird.f32 %v1432_v15 }
  0x42   : > { %1005 = vrcp.f32 %v1437_v17  ;;  %v1495_v42 = vld [vmem:[%s1395_s12 + $0x78] sm:$0xff]  ;;  %v410_v43 = vand.u32 2147483647, %v1461_v26  ;;  %v411_v46 = vand.u32 2147483647, %v1469_v30  ;;  %v1503_v48 = vadd.f32 1.0, %v406_v27 }
  0x43   : > { %1007 = vrcp.f32 %v1456_v24  ;;  %v412_v47 = vand.u32 2147483647, %v1472_v31  ;;  %v413_v50 = vand.u32 2147483647, %v1482_v36  ;;  %v414_v51 = vand.u32 2147483647, %v1485_v37 }
  0x44   : > { %v1507_v52 = vadd.f32 1.0, %v407_v32  ;;  %1009 = vrcp.f32 %v1475_v33  ;;  %v313_v53 = vperm.slane %v1466_v29, 0  ;;  %v415_v54 = vand.u32 2147483647, %v1492_v41  ;;  %s1171_s11 = scalar_lea.hbm %s1170_s10, 128 }
  0x45   : > { %v416_v55 = vand.u32 2147483647, %v1495_v42  ;;  %v1513_v57 = vadd.f32 1.0, %v408_v38  ;;  %v1515_v58 = vadd.f32 1.0, %v409_v39  ;;  %v1519_v61 = vadd.f32 1.0, %v410_v43  ;;  %p1172_p1 = scmp.ne.s32.totalorder %s1170_s10, %s1171_s11  ;;  %p1177_p12 = scmp.lt.s32.totalorder %s1175_s5, %s1171_s11 }
  0x46   : > { %v1458_v25 = vpop.eup %1001  ;;  %v1521_v62 = vadd.f32 1.0, %v411_v46  ;;  %v1523_v63 = vadd.f32 1.0, %v412_v47  ;;  %1011 = vrcp.f32 %v1503_v48  ;;  %v1528_v1 = vadd.f32 1.0, %v413_v50 }
  0x47   : > { %v1464_v28 = vpop.eup %1003  ;;  %v434_v34 = vmul.f32 %v1458_v25, %v1430_v14  ;;  %vm439_vm2 = vweird.f32 %v1458_v25  ;;  %1013 = vrcp.f32 %v1507_v52  ;;  %v444_v2 = vand.u32 2147483648, %v1430_v14  ;;  %p1173_p4 = pnand %p1172_p1, %p1363_p7  ;;  %p1178_p13 = por %p1177_p12, %p1176_p10 }
  0x48   : > { %v1479_v35 = vpop.eup %1005  ;;  %v448_v40 = vmul.f32 %v1464_v28, %v1432_v15  ;;  %vm453_vm4 = vweird.f32 %v1464_v28  ;;  %v442_v6 = vand.u32 2147483647, %v1430_v14  ;;  %v458_v11 = vand.u32 2147483648, %v1432_v15  ;;  %vm1543_vm5 = vmor %vm438_vm1, %vm439_vm2 }
  0x49   : > { %v435_v44 = vsub.f32 1.0, %v434_v34  ;;  %v462_v45 = vmul.f32 %v1479_v35, %v1437_v17  ;;  %v1526_v0 = vpop.eup %1007  ;;  %v456_v18 = vand.u32 2147483647, %v1432_v15  ;;  %vm466_vm6 = vweird.f32 %v1437_v17  ;;  %vm1558_vm8 = vmor %vm452_vm3, %vm453_vm4  ;;  %p1174_p8 = pneg %p1173_p4 }
  0x4a   : > { %v449_v49 = vsub.f32 1.0, %v448_v40  ;;  %v1537_v4 = vpop.eup %1009  ;;  %vm467_vm7 = vweird.f32 %v1479_v35  ;;  %v476_v20 = vmul.f32 %v1526_v0, %v1456_v24  ;;  %v1552_v27 = vadd.f32 1.0, %v414_v51 }
  0x4b   : > { %v463_v56 = vsub.f32 1.0, %v462_v45  ;;  %v436_v59 = vmul.f32 %v1458_v25, %v435_v44  ;;  %v1554_v14 = vadd.f32 1.0, %v415_v54  ;;  %v472_v34 = vand.u32 2147483648, %v1437_v17  ;;  %vm1581_vm10 = vmor %vm466_vm6, %vm467_vm7  ;;  %p1179_p0 = pnand %p1178_p13, %p1174_p8 }
  0x4c   : > { %v450_v60 = vmul.f32 %v1464_v28, %v449_v49  ;;  %1015 = vrcp.f32 %v1513_v57  ;;  %v1564_v38 = vpop.eup %1011  ;;  %v445_v39 = vor.u32 1.1754944e-38, %v444_v2  ;;  %v470_v43 = vand.u32 2147483647, %v1437_v17 }
  0x4d   : > { %v464_v3 = vmul.f32 %v1479_v35, %v463_v56  ;;  %v437_v5 = vadd.f32 %v1458_v25, %v436_v59  ;;  %v490_v44 = vmul.f32 %v1537_v4, %v1475_v33  ;;  %v1570_v45 = vpop.eup %1013  ;;  %v1572_v15 = vadd.f32 1.0, %v416_v55 }
  0x4e   : > { %v451_v10 = vadd.f32 %v1464_v28, %v450_v60  ;;  %vm443_vm9 = vcmp.eq.f32.partialorder %v442_v6, 8.507059e+37  ;;  %v459_v47 = vor.u32 1.1754944e-38, %v458_v11  ;;  %vm457_vm11 = vcmp.eq.f32.partialorder %v456_v18, 8.507059e+37 }
  0x4f   : > { %v465_v40 = vadd.f32 %v1479_v35, %v464_v3  ;;  %v441_v46 = vsel %vm1543_vm5, %v1458_v25, %v437_v5  ;;  %v477_v51 = vsub.f32 1.0, %v476_v20  ;;  %v491_v54 = vsub.f32 1.0, %v490_v44 }
  0x50   : > { %v455_v50 = vsel %vm1558_vm8, %v1464_v28, %v451_v10  ;;  %v315_v55 = vperm.slane %v1466_v29, 2  ;;  %v473_v25 = vor.u32 1.1754944e-38, %v472_v34  ;;  %v484_v56 = vand.u32 2147483647, %v1456_v24 }
  0x51   : > { %v504_v59 = vmul.f32 %v1564_v38, %v1503_v48  ;;  %v314_v17 = vperm.slane %v1466_v29, 1  ;;  %v1593_v60 = vsel %vm443_vm9, %v445_v39, %v441_v46  ;;  %v469_v2 = vsel %vm1581_vm10, %v1479_v35, %v465_v40 }
  0x52   : > { %vm471_vm12 = vcmp.eq.f32.partialorder %v470_v43, 8.507059e+37  ;;  %v1598_v28 = vpop.eup %1015  ;;  %v1600_v3 = vsel %vm457_vm11, %v459_v47, %v455_v50  ;;  %v518_v6 = vmul.f32 %v1570_v45, %v1507_v52  ;;  %v478_v10 = vmul.f32 %v1526_v0, %v477_v51 }
  0x53   : > { %v505_v5 = vsub.f32 1.0, %v504_v59  ;;  %vm481_vm14 = vweird.f32 %v1526_v0  ;;  %v486_v11 = vand.u32 2147483648, %v1456_v24  ;;  %v492_v13 = vmul.f32 %v1537_v4, %v491_v54 }
  0x54   : > { %v1609_v35 = vsel %vm471_vm12, %v473_v25, %v469_v2  ;;  %vm1611_vm15 = vcmp.eq.f32.partialorder %v484_v56, 8.507059e+37  ;;  %vm494_vm0 = vweird.f32 %v1475_v33  ;;  %v519_v20 = vsub.f32 1.0, %v518_v6  ;;  %vm1633_vm4 = vmor %vm480_vm13, %vm481_vm14 }
  0x55   : > { %vm495_vm1 = vweird.f32 %v1537_v4  ;;  %v498_v32 = vand.u32 2147483647, %v1475_v33  ;;  %v500_v34 = vand.u32 2147483648, %v1475_v33  ;;  %v506_v39 = vmul.f32 %v1564_v38, %v505_v5 }
  0x56   : > { %vm508_vm2 = vweird.f32 %v1503_v48  ;;  %vm509_vm3 = vweird.f32 %v1564_v38  ;;  %v520_v40 = vmul.f32 %v1570_v45, %v519_v20  ;;  %v532_v43 = vmul.f32 %v1598_v28, %v1513_v57  ;;  %vm1644_vm7 = vmor %vm494_vm0, %vm495_vm1 }
  0x57   : > { %v479_v44 = vadd.f32 %v1526_v0, %v478_v10  ;;  %v493_v46 = vadd.f32 %v1537_v4, %v492_v13  ;;  %v512_v47 = vand.u32 2147483647, %v1503_v48  ;;  %v514_v49 = vand.u32 2147483648, %v1503_v48  ;;  %vm1658_vm9 = vmor %vm508_vm2, %vm509_vm3 }
  0x58   : > { %vm522_vm5 = vweird.f32 %v1507_v52  ;;  %vm523_vm6 = vweird.f32 %v1570_v45  ;;  %v528_v51 = vand.u32 2147483648, %v1507_v52  ;;  %v533_v54 = vsub.f32 1.0, %v532_v43 }
  0x59   : > { %v487_v25 = vor.u32 1.1754944e-38, %v486_v11  ;;  %vm1648_vm8 = vcmp.eq.f32.partialorder %v498_v32, 8.507059e+37  ;;  %v507_v59 = vadd.f32 %v1564_v38, %v506_v39  ;;  %1017 = vrcp.f32 %v1515_v58  ;;  %vm1676_vm11 = vmor %vm522_vm5, %vm523_vm6 }
  0x5a   : > { %v501_v2 = vor.u32 1.1754944e-38, %v500_v34  ;;  %v521_v33 = vadd.f32 %v1570_v45, %v520_v40  ;;  %v526_v6 = vand.u32 2147483647, %v1507_v52  ;;  %v534_v10 = vmul.f32 %v1598_v28, %v533_v54 }
  0x5b   : > { %v483_v11 = vsel %vm1633_vm4, %v1526_v0, %v479_v44  ;;  %vm1668_vm10 = vcmp.eq.f32.partialorder %v512_v47, 8.507059e+37  ;;  %v515_v20 = vor.u32 1.1754944e-38, %v514_v49  ;;  %1019 = vrcp.f32 %v1519_v61 }
  0x5c   : > { %v497_v32 = vsel %vm1644_vm7, %v1537_v4, %v493_v46  ;;  %v529_v0 = vor.u32 1.1754944e-38, %v528_v51  ;;  %vm536_vm12 = vweird.f32 %v1513_v57  ;;  %vm537_vm13 = vweird.f32 %v1598_v28 }
  0x5d   : > { %v511_v34 = vsel %vm1658_vm9, %v1564_v38, %v507_v59  ;;  %v540_v52 = vand.u32 2147483647, %v1513_v57  ;;  %v542_v39 = vand.u32 2147483648, %v1513_v57  ;;  %1021 = vrcp.f32 %v1521_v62  ;;  %vm1706_vm0 = vmor %vm536_vm12, %vm537_vm13 }
  0x5e   : > { %v1694_v43 = vsel %vm1611_vm15, %v487_v25, %v483_v11  ;;  %v525_v4 = vsel %vm1676_vm11, %v1570_v45, %v521_v33  ;;  %vm527_vm14 = vcmp.eq.f32.partialorder %v526_v6, 8.507059e+37  ;;  %v535_v44 = vadd.f32 %v1598_v28, %v534_v10 }
  0x5f   : > { %v1700_v46 = vpop.eup %1017  ;;  %v1704_v38 = vsel %vm1648_vm8, %v501_v2, %v497_v32  ;;  %v554_v18 = vand.u32 2147483647, %v1515_v58  ;;  %v556_v47 = vand.u32 2147483648, %v1515_v58  ;;  %1023 = vrcp.f32 %v1523_v63 }
  0x60   : > { %v1717_v49 = vsel %vm1668_vm10, %v515_v20, %v511_v34  ;;  %v546_v50 = vmul.f32 %v1700_v46, %v1515_v58  ;;  %vm550_vm15 = vweird.f32 %v1515_v58  ;;  %v1724_v54 = vsel %vm527_vm14, %v529_v0, %v525_v4 }
  0x61   : > { %v1722_v51 = vpop.eup %1019  ;;  %vm1726_vm1 = vcmp.eq.f32.partialorder %v540_v52, 8.507059e+37  ;;  %v543_v56 = vor.u32 1.1754944e-38, %v542_v39  ;;  %v539_v24 = vsel %vm1706_vm0, %v1598_v28, %v535_v44  ;;  %v570_v5 = vand.u32 2147483648, %v1519_v61 }
  0x62   : > { %v547_v59 = vsub.f32 1.0, %v546_v50  ;;  %v560_v2 = vmul.f32 %v1722_v51, %v1519_v61  ;;  %vm1739_vm2 = vcmp.eq.f32.partialorder %v554_v18, 8.507059e+37  ;;  %v557_v10 = vor.u32 1.1754944e-38, %v556_v47 }
  0x63   : > { %v1737_v33 = vpop.eup %1021  ;;  %vm564_vm3 = vweird.f32 %v1519_v61  ;;  %vm578_vm4 = vweird.f32 %v1521_v62  ;;  %v582_v11 = vand.u32 2147483647, %v1521_v62  ;;  %v1753_v34 = vsel %vm1726_vm1, %v543_v56, %v539_v24 }
  0x64   : > { %v548_v20 = vmul.f32 %v1700_v46, %v547_v59  ;;  %v561_v48 = vsub.f32 1.0, %v560_v2  ;;  %v574_v32 = vmul.f32 %v1737_v33, %v1521_v62  ;;  %vm551_vm5 = vweird.f32 %v1700_v46 }
  0x65   : > { %v1749_v0 = vpop.eup %1023  ;;  %v584_v52 = vand.u32 2147483648, %v1521_v62  ;;  %1025 = vrcp.f32 %v1528_v1  ;;  %v571_v4 = vor.u32 1.1754944e-38, %v570_v5  ;;  %vm1768_vm7 = vcmp.eq.f32.partialorder %v582_v11, 8.507059e+37  ;;  %vm1775_vm9 = vmor %vm550_vm15, %vm551_vm5 }
  0x66   : > { %v562_v39 = vmul.f32 %v1722_v51, %v561_v48  ;;  %v575_v44 = vsub.f32 1.0, %v574_v32  ;;  %v588_v57 = vmul.f32 %v1749_v0, %v1523_v63  ;;  %vm592_vm8 = vweird.f32 %v1523_v63 }
  0x67   : > { %vm565_vm10 = vweird.f32 %v1722_v51  ;;  %vm579_vm11 = vweird.f32 %v1737_v33  ;;  %v598_v24 = vand.u32 2147483648, %v1523_v63  ;;  %vm593_vm12 = vweird.f32 %v1749_v0 }
  0x68   : > { %v576_v56 = vmul.f32 %v1737_v33, %v575_v44  ;;  %v563_v59 = vadd.f32 %v1722_v51, %v562_v39  ;;  %vm1797_vm13 = vmor %vm564_vm3, %vm565_vm10  ;;  %v612_v48 = vand.u32 2147483648, %v1528_v1  ;;  %vm606_vm1 = vweird.f32 %v1528_v1 }
  0x69   : > { %vm1809_vm14 = vmor %vm578_vm4, %vm579_vm11  ;;  %v599_v62 = vor.u32 1.1754944e-38, %v598_v24  ;;  %v610_v39 = vand.u32 2147483647, %v1528_v1  ;;  %v654_v32 = vand.u32 2147483648, %v1572_v15 }
  0x6a   : > { %v577_v29 = vadd.f32 %v1737_v33, %v576_v56  ;;  %vm1819_vm0 = vmor %vm592_vm8, %vm593_vm12  ;;  %v624_v56 = vand.u32 2147483647, %v1552_v27  ;;  %vm648_vm8 = vweird.f32 %v1572_v15 }
  0x6b   : > { %v1790_v5 = vpop.eup %1025  ;;  %vm1860_vm4 = vcmp.eq.f32.partialorder %v610_v39, 8.507059e+37 }
  0x6c   : > { %v581_v25 = vsel %vm1809_vm14, %v1737_v33, %v577_v29  ;;  %vm607_vm3 = vweird.f32 %v1790_v5  ;;  %vm1871_vm5 = vcmp.eq.f32.partialorder %v624_v56, 8.507059e+37 }
  0x6d   : > { %vm1888_vm10 = vmor %vm606_vm1, %vm607_vm3 }
  0xb9   : > { %v340_v40 = vpop.f32.mrf.mxu0 }
  0xba   : > { %v341_v45 = vadd.f32 %v340_v40, %v313_v53  ;;  %v568_v53 = vand.u32 2147483647, %v1519_v61 }
  0xbb   : > { %v360_v13 = vpop.f32.mrf.mxu1 }
  0xbc   : > { %v383_v28 = vmul.f32 1.442695, %v341_v45  ;;  %vm1759_vm6 = vcmp.eq.f32.partialorder %v568_v53, 8.507059e+37  ;;  %v361_v47 = vadd.f32 %v360_v13, %v314_v17  ;;  %v549_v45 = vadd.f32 %v1700_v46, %v548_v20 }
  0xbd   : > { %v589_v17 = vsub.f32 1.0, %v588_v57  ;;  %v596_v53 = vand.u32 2147483647, %v1523_v63  ;;  %v567_v63 = vsel %vm1797_vm13, %v1722_v51, %v563_v59  ;;  %v640_v20 = vand.u32 2147483648, %v1554_v14 }
  0xbe   : > { %1027 = vpow2.f32 %v383_v28  ;;  %v553_v11 = vsel %vm1775_vm9, %v1700_v46, %v549_v45  ;;  %v1803_v13 = vperm.slane %v361_v47, 0  ;;  %v602_v46 = vmul.f32 %v1790_v5, %v1528_v1 }
  0xbf   : > { %1029 = vrcp.f32 %v1552_v27  ;;  %v590_v2 = vmul.f32 %v1749_v0, %v589_v17  ;;  %vm1823_vm15 = vcmp.eq.f32.partialorder %v596_v53, 8.507059e+37  ;;  %v626_v17 = vand.u32 2147483648, %v1552_v27 }
  0xc0   : > { %v380_v18 = vpop.f32.mrf.mxu2  ;;  %1031 = vrcp.f32 %v1554_v14  ;;  %v603_v47 = vsub.f32 1.0, %v602_v46  ;;  %v572_v33 = vsel %vm1759_vm6, %v571_v4, %v567_v63  ;;  %v638_v28 = vand.u32 2147483647, %v1554_v14 }
  0xc1   : > { %v381_v58 = vadd.f32 %v380_v18, %v315_v55  ;;  %v585_v55 = vor.u32 1.1754944e-38, %v584_v52  ;;  %v591_v61 = vadd.f32 %v1749_v0, %v590_v2  ;;  %v1833_v18 = vsel %vm1739_vm2, %v557_v10, %v553_v11 }
  0xc2   : > { %1033 = vrcp.f32 %v1572_v15  ;;  %v613_v10 = vor.u32 1.1754944e-38, %v612_v48  ;;  %vm620_vm2 = vweird.f32 %v1552_v27  ;;  %v627_v29 = vor.u32 1.1754944e-38, %v626_v17 }
  0xc3   : > { %v1829_v57 = vperm.slane %v381_v58, 0  ;;  %v595_v6 = vsel %vm1819_vm0, %v1749_v0, %v591_v61  ;;  %v604_v58 = vmul.f32 %v1790_v5, %v603_v47  ;;  %v586_v0 = vsel %vm1768_vm7, %v585_v55, %v581_v25 }
  0xc4   : > { %v1028_v44 = vpop.eup %1027  ;;  %v600_v40 = vsel %vm1823_vm15, %v599_v62, %v595_v6  ;;  %vm634_vm6 = vweird.f32 %v1554_v14  ;;  %v652_v48 = vand.u32 2147483647, %v1572_v15  ;;  %vm1894_vm11 = vcmp.eq.f32.partialorder %v638_v28, 8.507059e+37 }
  0xc5   : > { %v1838_v45 = vpop.eup %1029  ;;  %v1854_v24 = vperm.slane %v1028_v44, 0  ;;  %v605_v46 = vadd.f32 %v1790_v5, %v604_v58  ;;  %v641_v1 = vor.u32 1.1754944e-38, %v640_v20  ;;  %v658_v25 = vmul.f32 %v1829_v57, %v1593_v60 }
  0xc6   : > { %v616_v51 = vmul.f32 %v1838_v45, %v1552_v27  ;;  %v1852_v53 = vpop.eup %1031  ;;  %vm621_vm7 = vweird.f32 %v1838_v45  ;;  %v659_v56 = vmul.f32 %v1829_v57, %v1600_v3  ;;  %v660_v17 = vmul.f32 %v1829_v57, %v1609_v35 }
  0xc7   : > { %v630_v11 = vmul.f32 %v1852_v53, %v1554_v14  ;;  %vm635_vm9 = vweird.f32 %v1852_v53  ;;  %vm1901_vm12 = vmor %vm620_vm2, %vm621_vm7  ;;  %v661_v58 = vmul.f32 %v1829_v57, %v1694_v43  ;;  %v609_v60 = vsel %vm1888_vm10, %v1790_v5, %v605_v46 }
  0xc8   : > { %v617_v2 = vsub.f32 1.0, %v616_v51  ;;  %v1034_v61 = vpop.eup %1033  ;;  %vm1914_vm13 = vmor %vm634_vm6, %vm635_vm9  ;;  %vm1923_vm0 = vcmp.eq.f32.partialorder %v652_v48, 8.507059e+37  ;;  %v655_v35 = vor.u32 1.1754944e-38, %v654_v32  ;;  %v662_v14 = vmul.f32 %v1829_v57, %v1704_v38 }
  0xc9   : > { %v631_v55 = vsub.f32 1.0, %v630_v11  ;;  %v644_v63 = vmul.f32 %v1034_v61, %v1572_v15  ;;  %vm649_vm14 = vweird.f32 %v1034_v61  ;;  %v663_v43 = vmul.f32 %v1829_v57, %v1717_v49 }
  0xca   : > { %v618_v50 = vmul.f32 %v1838_v45, %v617_v2  ;;  %v664_v28 = vmul.f32 %v1829_v57, %v1724_v54  ;;  %vm1941_vm15 = vmor %vm648_vm8, %vm649_vm14  ;;  %v675_v38 = vadd.f32 %v1854_v24, %v658_v25  ;;  %v614_v49 = vsel %vm1860_vm4, %v613_v10, %v609_v60 }
  0xcb   : > { %v632_v39 = vmul.f32 %v1852_v53, %v631_v55  ;;  %v645_v51 = vsub.f32 1.0, %v644_v63  ;;  %v665_v55 = vmul.f32 %v1829_v57, %v1753_v34  ;;  %v666_v15 = vmul.f32 %v1829_v57, %v1833_v18 }
  0xcc   : > { %v619_v62 = vadd.f32 %v1838_v45, %v618_v50  ;;  %v677_v50 = vadd.f32 %v1854_v24, %v660_v17  ;;  %v667_v46 = vmul.f32 %v1829_v57, %v572_v33  ;;  %v668_v48 = vmul.f32 %v1829_v57, %v586_v0 }
  0xcd   : > { %v633_v6 = vadd.f32 %v1852_v53, %v632_v39  ;;  %v646_v11 = vmul.f32 %v1034_v61, %v645_v51  ;;  %v679_v32 = vadd.f32 %v1854_v24, %v662_v14  ;;  %v680_v59 = vadd.f32 %v1854_v24, %v663_v43 }
  0xce   : > { %v623_v2 = vsel %vm1901_vm12, %v1838_v45, %v619_v62  ;;  %v676_v45 = vadd.f32 %v1854_v24, %v659_v56  ;;  %v681_v62 = vadd.f32 %v1854_v24, %v664_v28  ;;  %v691_v18 = vmul.f32 %v675_v38, %v1416_v7 }
  0xcf   : > { %v637_v5 = vsel %vm1914_vm13, %v1852_v53, %v633_v6  ;;  %v647_v54 = vadd.f32 %v1034_v61, %v646_v11  ;;  %v678_v53 = vadd.f32 %v1854_v24, %v661_v58  ;;  %v628_v52 = vsel %vm1871_vm5, %v627_v29, %v623_v2 }
  0xd0   : > { %v642_v10 = vsel %vm1894_vm11, %v641_v1, %v637_v5  ;;  %v692_v33 = vmul.f32 %v676_v45, %v1419_v8  ;;  %v693_v0 = vmul.f32 %v677_v50, %v1422_v9  ;;  %v669_v39 = vmul.f32 %v1829_v57, %v600_v40 }
  0xd1   : > { %v651_v34 = vsel %vm1941_vm15, %v1034_v61, %v647_v54  ;;  %v670_v4 = vmul.f32 %v1829_v57, %v614_v49  ;;  %v682_v29 = vadd.f32 %v1854_v24, %v665_v55  ;;  %v694_v44 = vmul.f32 %v678_v53, %v1427_v12 }
  0xd2   : > { %v656_v61 = vsel %vm1923_vm0, %v655_v35, %v651_v34  ;;  %v671_v63 = vmul.f32 %v1829_v57, %v628_v52  ;;  %v683_v47 = vadd.f32 %v1854_v24, %v666_v15  ;;  %v695_v7 = vmul.f32 %v679_v32, %v1435_v16 }
  0xd3   : > { %v672_v8 = vmul.f32 %v1829_v57, %v642_v10  ;;  %v684_v9 = vadd.f32 %v1854_v24, %v667_v46  ;;  %v685_v40 = vadd.f32 %v1854_v24, %v668_v48  ;;  %v696_v1 = vmul.f32 %v680_v59, %v1444_v19 }
  0xd4   : > { %v697_v12 = vmul.f32 %v681_v62, %v1448_v21  ;;  %v708_v25 = vadd.f32 %v1803_v13, %v691_v18  ;;  %v709_v56 = vadd.f32 %v1803_v13, %v692_v33  ;;  %v710_v17 = vadd.f32 %v1803_v13, %v693_v0 }
  0xd5   : > { %v673_v6 = vmul.f32 %v1829_v57, %v656_v61  ;;  %v686_v16 = vadd.f32 %v1854_v24, %v669_v39  ;;  %v698_v27 = vmul.f32 %v682_v29, %v1451_v22  ;;  %v711_v51 = vadd.f32 %v1803_v13, %v694_v44 }
  0xd6   : > { %v687_v58 = vadd.f32 %v1854_v24, %v670_v4  ;;  %v699_v19 = vmul.f32 %v683_v47, %v1454_v23  ;;  %v712_v21 = vadd.f32 %v1803_v13, %v695_v7  ;;  %724 = vst [vmem:[%s1995_s21] sm:$0xff] %v708_v25  ;;  %v688_v22 = vadd.f32 %v1854_v24, %v671_v63 }
  0xd7   : > { %v700_v57 = vmul.f32 %v684_v9, %v1461_v26  ;;  %v713_v60 = vadd.f32 %v1803_v13, %v696_v1  ;;  %725 = vst [vmem:[%s1995_s21 + $0x8] sm:$0xff] %v709_v56  ;;  %v689_v23 = vadd.f32 %v1854_v24, %v672_v8  ;;  %v701_v3 = vmul.f32 %v685_v40, %v1469_v30 }
  0xd8   : > { %v714_v35 = vadd.f32 %v1803_v13, %v697_v12  ;;  %726 = vst [vmem:[%s1995_s21 + $0x10] sm:$0xff] %v710_v17  ;;  %v690_v14 = vadd.f32 %v1854_v24, %v673_v6  ;;  %v702_v2 = vmul.f32 %v686_v16, %v1472_v31  ;;  %v715_v11 = vadd.f32 %v1803_v13, %v698_v27 }
  0xd9   : > { %727 = vst [vmem:[%s1995_s21 + $0x18] sm:$0xff] %v711_v51  ;;  %v703_v26 = vmul.f32 %v687_v58, %v1482_v36  ;;  %v716_v43 = vadd.f32 %v1803_v13, %v699_v19  ;;  %v704_v30 = vmul.f32 %v688_v22, %v1485_v37  ;;  %v717_v28 = vadd.f32 %v1803_v13, %v700_v57 }
  0xda   : > { %728 = vst [vmem:[%s1995_s21 + $0x20] sm:$0xff] %v712_v21  ;;  %v705_v31 = vmul.f32 %v689_v23, %v1492_v41  ;;  %v718_v24 = vadd.f32 %v1803_v13, %v701_v3  ;;  %v706_v36 = vmul.f32 %v690_v14, %v1495_v42  ;;  %v719_v37 = vadd.f32 %v1803_v13, %v702_v2 }
  0xdb   : > { %729 = vst [vmem:[%s1995_s21 + $0x28] sm:$0xff] %v713_v60  ;;  %v720_v5 = vadd.f32 %v1803_v13, %v703_v26  ;;  %v721_v41 = vadd.f32 %v1803_v13, %v704_v30 }
  0xdc   : > { %730 = vst [vmem:[%s1995_s21 + $0x30] sm:$0xff] %v714_v35  ;;  %v722_v20 = vadd.f32 %v1803_v13, %v705_v31  ;;  %v723_v42 = vadd.f32 %v1803_v13, %v706_v36 }
  0xdd   : > { %731 = vst [vmem:[%s1995_s21 + $0x38] sm:$0xff] %v715_v11 }
  0xde   : > { %732 = vst [vmem:[%s1995_s21 + $0x40] sm:$0xff] %v716_v43 }
  0xdf   : > { %733 = vst [vmem:[%s1995_s21 + $0x48] sm:$0xff] %v717_v28 }
  0xe0   : > { %734 = vst [vmem:[%s1995_s21 + $0x50] sm:$0xff] %v718_v24 }
  0xe1   : > { %735 = vst [vmem:[%s1995_s21 + $0x58] sm:$0xff] %v719_v37 }
  0xe2   : > { %736 = vst [vmem:[%s1995_s21 + $0x60] sm:$0xff] %v720_v5 }
  0xe3   : > { %737 = vst [vmem:[%s1995_s21 + $0x68] sm:$0xff] %v721_v41 }
  0xe4   : > { %738 = vst [vmem:[%s1995_s21 + $0x70] sm:$0xff] %v722_v20 }
  0xe5   : > { %739 = vst [vmem:[%s1995_s21 + $0x78] sm:$0xff] %v723_v42 }
  0xe6   : > { %1182 = shalt.err (!%p1179_p0)
}
  0xe7   : > { %s1257_s14 = smov 128   ;;  %s1258_s2 = smov 8  }
  0xe8   : > { %919 = dma.vmem_to_hbm [thread:$0]  (%p1363_p7), %s756_s7, 2048, %s758_s8, %s741_s9, %s1257_s14, %s1257_s14, %s1258_s2  }
  0xe9 PF: > { %s772_s3 = sand.u32 1, %s1229_s15   ;;  %p936_p3 = pnand %p888_p11, %p1329_p6 }
  0xea   : > { %s773_s12 = scalar_lea.sflag [#allocation4], %s772_s3 }
  0xeb   : > { %p937_p5 = pneg %p936_p3 }
  0xed   : > { %1224 = dma.done.wait (%p937_p5), %s773_s12, 2048  }
  0xee   : > { %1226 = vsyncadd (%p937_p5), %s773_s12, 4294965248  ;;  %s24_s20 = sadd.s32 1, %s1249_s20   ;;  %s2148_s17 = sld [smem:[#allocation16_spill]] }
  0xef   : > { %p21_p9 = scmp.ge.s32.totalorder %s24_s20, 4   ;;  %s2149_s28 = sld [smem:[#allocation18_spill]] }
  0xf0   : > { %s2150_s22 = sld [smem:[#allocation17_spill]]  ;;  %s2151_s15 = smov %s1233_s16 }
  0xf1   : > { %s2154_s18 = smov %s1245_s19 }
  0xf2   :  { %23 = sbr.rel (!%p21_p9) target bundleno = 12 (0xc), region = 102 }
  0xf4   : > { %s2152_s16 = smov %s2148_s17 }
  0xf5   : > { %s2153_s17 = smov %s2149_s28 }
  0xf6   : > { %s2155_s19 = smov %s2150_s22 }
  0xf7   :  { %779 = vsyncpa [#allocation3], 1 }
  0xf8   :  { %781 = vsyncpa [#allocation3 + $0x1], 1 }
  0xf9   :  { %782 = vsyncpa [#allocation6], 1 }
  0xfa   :  { %784 = vsyncpa [#allocation6 + $0x1], 1 }
  0xfb   :  { %785 = vsyncpa [#allocation9], 1 }
  0xfc   :  { %786 = vsyncpa [#allocation4], 1 }
  0xfd   :  { %788 = vsyncpa [#allocation4 + $0x1], 1 }

</bundles_post_ra>
